<compile_context>
chip_gen: v7x
topology: tpu7x:2x2x1
jax: 0.10.0
libtpu: 0.0.40
codegen_flags: <defaults>
</compile_context>

<pallas_src>
import functools

import jax
import jax.numpy as jnp
import numpy as np
from jax.experimental import pallas as pl
from jax.experimental.pallas import tpu as pltpu

# ---- problem sizes (small, consistent with the module) ------------------------
N_NODES  = 16      # total nodes across the batch of graphs
N_FEAT   = 16      # num_features (node attribute dim)
DIM      = 32      # args.hidden
N_GRAPH  = 2       # number of graphs in the batch
N_CLASS  = 4       # num_classes
N_LAYERS = 5
BN_EPS   = 1e-5
GIN_EPS  = 0.0     # GINConv default eps (train_eps=False)

# ---- padded, lane-dense layout -------------------------------------------------
LANE = 128         # feature / class lanes (pad 16 / 32 / 4 -> 128)
GPAD = 8           # padded graph count (one full sublane group)

# graph slab: rows [0:16) = A_hat (cols 0:16), rows [16:24) = pooling matrix
# (cols 0:16), rows [24:40) = node features (cols 0:128, 0:16 real)
SLAB_A0   = 0
SLAB_P0   = N_NODES                    # 16
SLAB_X0   = N_NODES + GPAD             # 24
SLAB_ROWS = N_NODES + GPAD + N_NODES   # 40 (multiple of 8)

N_MATS = 2 * N_LAYERS + 2              # W1_l, W2_l per layer + Wfc1, Wfc2 -> 12
N_VECS = 4 * N_LAYERS + 2              # b1, b2, residual-scale, shift + bfc1, bfc2
VROWS  = 24                            # vector slab rows padded to a multiple of 8
FC1_W, FC2_W = 2 * N_LAYERS, 2 * N_LAYERS + 1
FC1_B, FC2_B = 4 * N_LAYERS, 4 * N_LAYERS + 1

# advisory cost estimate (de-padded node dim, padded lane dim)
_FLOPS = (N_LAYERS * (2 * N_NODES * N_NODES * LANE + 2 * 2 * N_NODES * LANE * LANE)
          + 2 * GPAD * N_NODES * LANE + 2 * 2 * GPAD * LANE * LANE)
_TRANS = GPAD * LANE + GPAD
_BYTES = (SLAB_ROWS * LANE * 4 + N_MATS * LANE * LANE * 2
          + VROWS * LANE * 4 + GPAD * LANE * 4)


# ------------------------------- Pallas kernel ----------------------------------
def gin_kernel(g_ref, w_ref, v_ref, out_ref, *, apply_scale):
    # g_ref: (40, 128) f32   packed [A_hat ; pooling ; node features]
    # w_ref: (12, 128, 128) bf16  packed matmul weights (BN scale pre-folded)
    # v_ref: (24, 128) f32   packed per-channel vectors
    # out_ref: (8, 128) f32  padded log-softmax output
    A = g_ref[pl.ds(SLAB_A0, N_NODES), pl.ds(0, N_NODES)]   # (16, 16)  f32
    P = g_ref[pl.ds(SLAB_P0, GPAD), pl.ds(0, N_NODES)]      # (8, 16)   f32
    x = g_ref[pl.ds(SLAB_X0, N_NODES), :]                   # (16, 128) f32

    for l in range(N_LAYERS):
        W1 = w_ref[2 * l]                                    # (128, 128) bf16
        W2 = w_ref[2 * l + 1]                                # BN scale folded in
        b1    = v_ref[pl.ds(4 * l + 0, 1), :]
        b2    = v_ref[pl.ds(4 * l + 1, 1), :]
        shift = v_ref[pl.ds(4 * l + 3, 1), :]

        # GINConv: h = MLP(A_hat @ x)   (self-term already folded into A_hat)
        h = jnp.dot(A, x, preferred_element_type=jnp.float32)               # (16,128)
        h = jnp.dot(h.astype(jnp.bfloat16), W1,
                    preferred_element_type=jnp.float32) + b1
        h = jnp.maximum(h, 0.0)
        h = jnp.dot(h.astype(jnp.bfloat16), W2,
                    preferred_element_type=jnp.float32) + b2
        # F.relu after the conv, then folded BatchNorm1d (eval mode)
        h = jnp.maximum(h, 0.0)
        if apply_scale:  # only emitted if some BN scale was negative (host check)
            h = h * v_ref[pl.ds(4 * l + 2, 1), :]
        x = h + shift

    # global_add_pool: sum node features per graph -> (8, 128)
    pooled = jnp.dot(P, x, preferred_element_type=jnp.float32)
    h = jnp.dot(pooled.astype(jnp.bfloat16), w_ref[FC1_W],
                preferred_element_type=jnp.float32) + v_ref[pl.ds(FC1_B, 1), :]
    h = jnp.maximum(h, 0.0)
    # dropout(p=0.5) is identity in eval mode
    logits = jnp.dot(h.astype(jnp.bfloat16), w_ref[FC2_W],
                     preferred_element_type=jnp.float32) + v_ref[pl.ds(FC2_B, 1), :]
    # padded class lanes already carry -1e30 via the baked fc2 bias
    m = jnp.max(logits, axis=-1, keepdims=True)
    z = logits - m
    out_ref[...] = z - jnp.log(jnp.sum(jnp.exp(z), axis=-1, keepdims=True))


def _net_forward(g_slab, w_slab, v_slab, *, apply_scale):
    out_pad = pl.pallas_call(
        functools.partial(gin_kernel, apply_scale=apply_scale),
        out_shape=jax.ShapeDtypeStruct((GPAD, LANE), jnp.float32),
        in_specs=[pl.BlockSpec(memory_space=pltpu.MemorySpace.VMEM)] * 3,
        out_specs=pl.BlockSpec(memory_space=pltpu.MemorySpace.VMEM),
        cost_estimate=pl.CostEstimate(flops=_FLOPS, transcendentals=_TRANS,
                                      bytes_accessed=_BYTES),
    )(g_slab, w_slab, v_slab)
    return out_pad[:N_GRAPH, :N_CLASS]


net_forward = jax.jit(_net_forward, static_argnames=("apply_scale",))


# ------------------------------ pure-JAX references -----------------------------
def net_forward_ref(A, P, x, params_flat):
    """Original module semantics in f32 (eval-mode BN / dropout)."""
    idx = 0
    h = x
    for _ in range(N_LAYERS):
        W1, b1, W2, b2, g, be, mu, var = params_flat[idx:idx + 8]
        idx += 8
        t = (1.0 + GIN_EPS) * h + A @ h
        t = jnp.maximum(t @ W1 + b1, 0.0)
        t = t @ W2 + b2
        t = jnp.maximum(t, 0.0)
        h = (t - mu) * jax.lax.rsqrt(var + BN_EPS) * g + be
    Wfc1, bfc1, Wfc2, bfc2 = params_flat[idx:idx + 4]
    pooled = P @ h
    t = jnp.maximum(pooled @ Wfc1 + bfc1, 0.0)
    logits = t @ Wfc2 + bfc2
    return jax.nn.log_softmax(logits, axis=-1)


def net_forward_slab_ref(g_slab, w_slab, v_slab, apply_scale):
    """Exact mirror of the kernel math (bf16 weights/operands, f32 accumulate)."""
    A = g_slab[SLAB_A0:SLAB_A0 + N_NODES, :N_NODES]
    P = g_slab[SLAB_P0:SLAB_P0 + GPAD, :N_NODES]
    x = g_slab[SLAB_X0:SLAB_X0 + N_NODES, :]
    for l in range(N_LAYERS):
        W1, W2 = w_slab[2 * l], w_slab[2 * l + 1]
        b1, b2 = v_slab[4 * l + 0], v_slab[4 * l + 1]
        res, shift = v_slab[4 * l + 2], v_slab[4 * l + 3]
        h = jnp.dot(A, x, preferred_element_type=jnp.float32)
        h = jnp.maximum(jnp.dot(h.astype(jnp.bfloat16), W1,
                                preferred_element_type=jnp.float32) + b1, 0.0)
        h = jnp.maximum(jnp.dot(h.astype(jnp.bfloat16), W2,
                                preferred_element_type=jnp.float32) + b2, 0.0)
        if apply_scale:
            h = h * res
        x = h + shift
    pooled = jnp.dot(P, x, preferred_element_type=jnp.float32)
    h = jnp.maximum(jnp.dot(pooled.astype(jnp.bfloat16), w_slab[FC1_W],
                            preferred_element_type=jnp.float32) + v_slab[FC1_B], 0.0)
    logits = jnp.dot(h.astype(jnp.bfloat16), w_slab[FC2_W],
                     preferred_element_type=jnp.float32) + v_slab[FC2_B]
    return jax.nn.log_softmax(logits, axis=-1)[:N_GRAPH, :N_CLASS]


# ------------------------------ parameter init ----------------------------------
def init_params(key):
    params = []
    in_dim = N_FEAT
    for _ in range(N_LAYERS):
        key, k1, k2, k3, k4, k5, k6, k7, k8 = jax.random.split(key, 9)
        W1 = jax.random.normal(k1, (in_dim, DIM), jnp.float32) / np.sqrt(in_dim)
        b1 = 0.05 * jax.random.normal(k2, (1, DIM), jnp.float32)
        W2 = jax.random.normal(k3, (DIM, DIM), jnp.float32) / np.sqrt(DIM)
        b2 = 0.05 * jax.random.normal(k4, (1, DIM), jnp.float32)
        gamma = 1.0 + 0.1 * jax.random.normal(k5, (1, DIM), jnp.float32)
        beta = 0.1 * jax.random.normal(k6, (1, DIM), jnp.float32)
        mu = 0.05 * jax.random.normal(k7, (1, DIM), jnp.float32)
        var = 1.0 + 0.1 * jax.random.uniform(k8, (1, DIM), jnp.float32)
        params += [W1, b1, W2, b2, gamma, beta, mu, var]
        in_dim = DIM
    key, k1, k2, k3, k4 = jax.random.split(key, 5)
    Wfc1 = jax.random.normal(k1, (DIM, DIM), jnp.float32) / np.sqrt(DIM)
    bfc1 = 0.05 * jax.random.normal(k2, (1, DIM), jnp.float32)
    Wfc2 = jax.random.normal(k3, (DIM, N_CLASS), jnp.float32) / np.sqrt(DIM)
    bfc2 = 0.05 * jax.random.normal(k4, (1, N_CLASS), jnp.float32)
    params += [Wfc1, bfc1, Wfc2, bfc2]
    return tuple(params)


# -------------------- host-side folding + slab packing (perf) -------------------
def _pad_mat(W):
    r, c = W.shape
    return jnp.zeros((LANE, LANE), jnp.float32).at[:r, :c].set(W)


def _pad_vec(v, fill=0.0):
    return jnp.full((1, LANE), fill, jnp.float32).at[:, :v.shape[-1]].set(v.reshape(1, -1))


def pack_params(params_flat):
    """Fold BN into W2/b2 (+shift), pack everything into two dense slabs.

    Returns (w_slab bf16 [12,128,128], v_slab f32 [24,128], apply_scale bool).
    """
    w_list, v_list = [], []
    idx = 0
    need_residual = False
    for _ in range(N_LAYERS):
        W1, b1, W2, b2, g, be, mu, var = params_flat[idx:idx + 8]
        idx += 8
        scale = g * jax.lax.rsqrt(var + BN_EPS)           # (1, DIM)
        shift = be - mu * scale                           # (1, DIM)
        pos = scale >= 0.0
        fold = jnp.where(pos, scale, 1.0)                 # folded into W2/b2
        residual = jnp.where(pos, 1.0, scale)             # applied post-relu iff needed
        need_residual = need_residual or bool(jnp.any(~pos))
        W2f = W2 * fold                                   # column-wise scale
        b2f = b2 * fold
        w_list += [_pad_mat(W1), _pad_mat(W2f)]
        v_list += [_pad_vec(b1), _pad_vec(b2f), _pad_vec(residual), _pad_vec(shift)]
    Wfc1, bfc1, Wfc2, bfc2 = params_flat[idx:idx + 4]
    w_list += [_pad_mat(Wfc1), _pad_mat(Wfc2)]
    # class-lane mask baked into fc2 bias: pad lanes get -1e30
    v_list += [_pad_vec(bfc1), _pad_vec(bfc2, fill=-1e30)]

    w_slab = jnp.stack(w_list, axis=0).astype(jnp.bfloat16)               # (12,128,128)
    v_slab = jnp.concatenate(
        v_list + [jnp.zeros((VROWS - N_VECS, LANE), jnp.float32)], 0)     # (24,128)
    return w_slab, v_slab, need_residual


# ------------------------------ graph construction ------------------------------
def build_graph():
    # two graphs of 8 nodes each, ring topology, bidirectional edges
    nodes_per_graph = N_NODES // N_GRAPH
    src, dst = [], []
    for g in range(N_GRAPH):
        base = g * nodes_per_graph
        for i in range(nodes_per_graph):
            a = base + i
            b = base + (i + 1) % nodes_per_graph
            src += [a, b]
            dst += [b, a]
    src = jnp.array(src, jnp.int32)
    dst = jnp.array(dst, jnp.int32)
    # A[dst, src] += 1  ->  (A @ x)[i] = sum_{j -> i} x[j]
    A = jnp.zeros((N_NODES, N_NODES), jnp.float32).at[dst, src].add(1.0)
    batch = jnp.repeat(jnp.arange(N_GRAPH, dtype=jnp.int32), nodes_per_graph)
    P = (batch[None, :] == jnp.arange(N_GRAPH, dtype=jnp.int32)[:, None]).astype(jnp.float32)
    return A, P


def build_graph_slab(A, P, x):
    """Fold GIN self-term into A and pack A_hat / pooling / features into one slab."""
    A_hat = A + (1.0 + GIN_EPS) * jnp.eye(N_NODES, dtype=jnp.float32)
    g = jnp.zeros((SLAB_ROWS, LANE), jnp.float32)
    g = g.at[SLAB_A0:SLAB_A0 + N_NODES, :N_NODES].set(A_hat)
    g = g.at[SLAB_P0:SLAB_P0 + N_GRAPH, :N_NODES].set(P)
    g = g.at[SLAB_X0:SLAB_X0 + N_NODES, :N_FEAT].set(x)
    return g


# ----------------------------------- main ----------------------------------------
if __name__ == "__main__":
    key = jax.random.PRNGKey(0)
    key, kx, kp = jax.random.split(key, 3)

    A, P = build_graph()
    x = jax.random.normal(kx, (N_NODES, N_FEAT), jnp.float32)
    params = init_params(kp)

    # host-side folding / packing / padding (pure layout plumbing, no math change)
    g_slab = build_graph_slab(A, P, x)
    w_slab, v_slab, apply_scale = pack_params(params)

    out = net_forward(g_slab, w_slab, v_slab, apply_scale=apply_scale)
    out = jax.block_until_ready(out)
    out_np = np.asarray(out)

    # (1) structural check: identical math (bf16 weights, f32 accum) in pure JAX
    ref_slab = np.asarray(net_forward_slab_ref(g_slab, w_slab, v_slab, apply_scale))
    np.testing.assert_allclose(out_np, ref_slab, rtol=1e-3, atol=1e-3)

    # (2) vs. original f32 module semantics; loose tolerance covers bf16 weight quantization
    ref_f32 = np.asarray(net_forward_ref(A, P, x, params))
    np.testing.assert_allclose(out_np, ref_f32, rtol=1e-1, atol=5e-1)

    # (3) log-probabilities exponentiate to a distribution
    np.testing.assert_allclose(np.exp(out_np).sum(-1), np.ones(N_GRAPH), rtol=1e-3, atol=1e-3)

    print("KERNEL_OK")
</pallas_src>

<mosaic_0001>
module attributes {stable_mosaic.version = 11 : i64} {
  func.func @gin_kernel(%arg0: memref<40x128xf32, #tpu.memory_space<vmem>>, %arg1: memref<12x128x128xbf16, #tpu.memory_space<vmem>>, %arg2: memref<24x128xf32, #tpu.memory_space<vmem>>, %arg3: memref<8x128xf32, #tpu.memory_space<vmem>>) attributes {dimension_semantics = [], scalar_prefetch = 0 : i64, scratch_operands = 0 : i64, tpu.core_type = #tpu.core_type<tc>} {
    %c0 = arith.constant 0 : index
    %c0_0 = arith.constant 0 : index
    %0 = vector.load %arg0[%c0, %c0_0] : memref<40x128xf32, #tpu.memory_space<vmem>>, vector<16x16xf32>
    %c16 = arith.constant 16 : index
    %c0_1 = arith.constant 0 : index
    %1 = vector.load %arg0[%c16, %c0_1] : memref<40x128xf32, #tpu.memory_space<vmem>>, vector<8x16xf32>
    %c24 = arith.constant 24 : index
    %c0_2 = arith.constant 0 : index
    %2 = vector.load %arg0[%c24, %c0_2] : memref<40x128xf32, #tpu.memory_space<vmem>>, vector<16x128xf32>
    %c0_3 = arith.constant 0 : index
    %c0_4 = arith.constant 0 : index
    %c0_5 = arith.constant 0 : index
    %3 = vector.load %arg1[%c0_3, %c0_4, %c0_5] : memref<12x128x128xbf16, #tpu.memory_space<vmem>>, vector<1x128x128xbf16>
    %4 = vector.shape_cast %3 : vector<1x128x128xbf16> to vector<128x128xbf16>
    %c1 = arith.constant 1 : index
    %c0_6 = arith.constant 0 : index
    %c0_7 = arith.constant 0 : index
    %5 = vector.load %arg1[%c1, %c0_6, %c0_7] : memref<12x128x128xbf16, #tpu.memory_space<vmem>>, vector<1x128x128xbf16>
    %6 = vector.shape_cast %5 : vector<1x128x128xbf16> to vector<128x128xbf16>
    %c0_8 = arith.constant 0 : index
    %c0_9 = arith.constant 0 : index
    %7 = vector.load %arg2[%c0_8, %c0_9] : memref<24x128xf32, #tpu.memory_space<vmem>>, vector<1x128xf32>
    %c1_10 = arith.constant 1 : index
    %c0_11 = arith.constant 0 : index
    %8 = vector.load %arg2[%c1_10, %c0_11] : memref<24x128xf32, #tpu.memory_space<vmem>>, vector<1x128xf32>
    %c3 = arith.constant 3 : index
    %c0_12 = arith.constant 0 : index
    %9 = vector.load %arg2[%c3, %c0_12] : memref<24x128xf32, #tpu.memory_space<vmem>>, vector<1x128xf32>
    %cst = arith.constant dense<0.000000e+00> : vector<16x128xf32>
    %10 = tpu.matmul %0, %2, %cst {dimension_numbers = #tpu.dot_dimension_numbers<[1], [0], [0], [1], [0, 0, 1, 1], [], []>} : vector<16x16xf32>, vector<16x128xf32>, vector<16x128xf32> -> vector<16x128xf32>
    %11 = arith.truncf %10 : vector<16x128xf32> to vector<16x128xbf16>
    %cst_13 = arith.constant dense<0.000000e+00> : vector<16x128xf32>
    %12 = tpu.matmul %11, %4, %cst_13 {dimension_numbers = #tpu.dot_dimension_numbers<[1], [0], [0], [1], [0, 0, 1, 1], [], []>} : vector<16x128xbf16>, vector<128x128xbf16>, vector<16x128xf32> -> vector<16x128xf32>
    %13 = vector.broadcast %7 : vector<1x128xf32> to vector<16x128xf32>
    %14 = arith.addf %12, %13 : vector<16x128xf32>
    %cst_14 = arith.constant 0.000000e+00 : f32
    %15 = vector.broadcast %cst_14 : f32 to vector<16x128xf32>
    %16 = arith.maximumf %14, %15 : vector<16x128xf32>
    %17 = arith.truncf %16 : vector<16x128xf32> to vector<16x128xbf16>
    %cst_15 = arith.constant dense<0.000000e+00> : vector<16x128xf32>
    %18 = tpu.matmul %17, %6, %cst_15 {dimension_numbers = #tpu.dot_dimension_numbers<[1], [0], [0], [1], [0, 0, 1, 1], [], []>} : vector<16x128xbf16>, vector<128x128xbf16>, vector<16x128xf32> -> vector<16x128xf32>
    %19 = vector.broadcast %8 : vector<1x128xf32> to vector<16x128xf32>
    %20 = arith.addf %18, %19 : vector<16x128xf32>
    %cst_16 = arith.constant 0.000000e+00 : f32
    %21 = vector.broadcast %cst_16 : f32 to vector<16x128xf32>
    %22 = arith.maximumf %20, %21 : vector<16x128xf32>
    %23 = vector.broadcast %9 : vector<1x128xf32> to vector<16x128xf32>
    %24 = arith.addf %22, %23 : vector<16x128xf32>
    %c2 = arith.constant 2 : index
    %c0_17 = arith.constant 0 : index
    %c0_18 = arith.constant 0 : index
    %25 = vector.load %arg1[%c2, %c0_17, %c0_18] : memref<12x128x128xbf16, #tpu.memory_space<vmem>>, vector<1x128x128xbf16>
    %26 = vector.shape_cast %25 : vector<1x128x128xbf16> to vector<128x128xbf16>
    %c3_19 = arith.constant 3 : index
    %c0_20 = arith.constant 0 : index
    %c0_21 = arith.constant 0 : index
    %27 = vector.load %arg1[%c3_19, %c0_20, %c0_21] : memref<12x128x128xbf16, #tpu.memory_space<vmem>>, vector<1x128x128xbf16>
    %28 = vector.shape_cast %27 : vector<1x128x128xbf16> to vector<128x128xbf16>
    %c4 = arith.constant 4 : index
    %c0_22 = arith.constant 0 : index
    %29 = vector.load %arg2[%c4, %c0_22] : memref<24x128xf32, #tpu.memory_space<vmem>>, vector<1x128xf32>
    %c5 = arith.constant 5 : index
    %c0_23 = arith.constant 0 : index
    %30 = vector.load %arg2[%c5, %c0_23] : memref<24x128xf32, #tpu.memory_space<vmem>>, vector<1x128xf32>
    %c7 = arith.constant 7 : index
    %c0_24 = arith.constant 0 : index
    %31 = vector.load %arg2[%c7, %c0_24] : memref<24x128xf32, #tpu.memory_space<vmem>>, vector<1x128xf32>
    %cst_25 = arith.constant dense<0.000000e+00> : vector<16x128xf32>
    %32 = tpu.matmul %0, %24, %cst_25 {dimension_numbers = #tpu.dot_dimension_numbers<[1], [0], [0], [1], [0, 0, 1, 1], [], []>} : vector<16x16xf32>, vector<16x128xf32>, vector<16x128xf32> -> vector<16x128xf32>
    %33 = arith.truncf %32 : vector<16x128xf32> to vector<16x128xbf16>
    %cst_26 = arith.constant dense<0.000000e+00> : vector<16x128xf32>
    %34 = tpu.matmul %33, %26, %cst_26 {dimension_numbers = #tpu.dot_dimension_numbers<[1], [0], [0], [1], [0, 0, 1, 1], [], []>} : vector<16x128xbf16>, vector<128x128xbf16>, vector<16x128xf32> -> vector<16x128xf32>
    %35 = vector.broadcast %29 : vector<1x128xf32> to vector<16x128xf32>
    %36 = arith.addf %34, %35 : vector<16x128xf32>
    %cst_27 = arith.constant 0.000000e+00 : f32
    %37 = vector.broadcast %cst_27 : f32 to vector<16x128xf32>
    %38 = arith.maximumf %36, %37 : vector<16x128xf32>
    %39 = arith.truncf %38 : vector<16x128xf32> to vector<16x128xbf16>
    %cst_28 = arith.constant dense<0.000000e+00> : vector<16x128xf32>
    %40 = tpu.matmul %39, %28, %cst_28 {dimension_numbers = #tpu.dot_dimension_numbers<[1], [0], [0], [1], [0, 0, 1, 1], [], []>} : vector<16x128xbf16>, vector<128x128xbf16>, vector<16x128xf32> -> vector<16x128xf32>
    %41 = vector.broadcast %30 : vector<1x128xf32> to vector<16x128xf32>
    %42 = arith.addf %40, %41 : vector<16x128xf32>
    %cst_29 = arith.constant 0.000000e+00 : f32
    %43 = vector.broadcast %cst_29 : f32 to vector<16x128xf32>
    %44 = arith.maximumf %42, %43 : vector<16x128xf32>
    %45 = vector.broadcast %31 : vector<1x128xf32> to vector<16x128xf32>
    %46 = arith.addf %44, %45 : vector<16x128xf32>
    %c4_30 = arith.constant 4 : index
    %c0_31 = arith.constant 0 : index
    %c0_32 = arith.constant 0 : index
    %47 = vector.load %arg1[%c4_30, %c0_31, %c0_32] : memref<12x128x128xbf16, #tpu.memory_space<vmem>>, vector<1x128x128xbf16>
    %48 = vector.shape_cast %47 : vector<1x128x128xbf16> to vector<128x128xbf16>
    %c5_33 = arith.constant 5 : index
    %c0_34 = arith.constant 0 : index
    %c0_35 = arith.constant 0 : index
    %49 = vector.load %arg1[%c5_33, %c0_34, %c0_35] : memref<12x128x128xbf16, #tpu.memory_space<vmem>>, vector<1x128x128xbf16>
    %50 = vector.shape_cast %49 : vector<1x128x128xbf16> to vector<128x128xbf16>
    %c8 = arith.constant 8 : index
    %c0_36 = arith.constant 0 : index
    %51 = vector.load %arg2[%c8, %c0_36] : memref<24x128xf32, #tpu.memory_space<vmem>>, vector<1x128xf32>
    %c9 = arith.constant 9 : index
    %c0_37 = arith.constant 0 : index
    %52 = vector.load %arg2[%c9, %c0_37] : memref<24x128xf32, #tpu.memory_space<vmem>>, vector<1x128xf32>
    %c11 = arith.constant 11 : index
    %c0_38 = arith.constant 0 : index
    %53 = vector.load %arg2[%c11, %c0_38] : memref<24x128xf32, #tpu.memory_space<vmem>>, vector<1x128xf32>
    %cst_39 = arith.constant dense<0.000000e+00> : vector<16x128xf32>
    %54 = tpu.matmul %0, %46, %cst_39 {dimension_numbers = #tpu.dot_dimension_numbers<[1], [0], [0], [1], [0, 0, 1, 1], [], []>} : vector<16x16xf32>, vector<16x128xf32>, vector<16x128xf32> -> vector<16x128xf32>
    %55 = arith.truncf %54 : vector<16x128xf32> to vector<16x128xbf16>
    %cst_40 = arith.constant dense<0.000000e+00> : vector<16x128xf32>
    %56 = tpu.matmul %55, %48, %cst_40 {dimension_numbers = #tpu.dot_dimension_numbers<[1], [0], [0], [1], [0, 0, 1, 1], [], []>} : vector<16x128xbf16>, vector<128x128xbf16>, vector<16x128xf32> -> vector<16x128xf32>
    %57 = vector.broadcast %51 : vector<1x128xf32> to vector<16x128xf32>
    %58 = arith.addf %56, %57 : vector<16x128xf32>
    %cst_41 = arith.constant 0.000000e+00 : f32
    %59 = vector.broadcast %cst_41 : f32 to vector<16x128xf32>
    %60 = arith.maximumf %58, %59 : vector<16x128xf32>
    %61 = arith.truncf %60 : vector<16x128xf32> to vector<16x128xbf16>
    %cst_42 = arith.constant dense<0.000000e+00> : vector<16x128xf32>
    %62 = tpu.matmul %61, %50, %cst_42 {dimension_numbers = #tpu.dot_dimension_numbers<[1], [0], [0], [1], [0, 0, 1, 1], [], []>} : vector<16x128xbf16>, vector<128x128xbf16>, vector<16x128xf32> -> vector<16x128xf32>
    %63 = vector.broadcast %52 : vector<1x128xf32> to vector<16x128xf32>
    %64 = arith.addf %62, %63 : vector<16x128xf32>
    %cst_43 = arith.constant 0.000000e+00 : f32
    %65 = vector.broadcast %cst_43 : f32 to vector<16x128xf32>
    %66 = arith.maximumf %64, %65 : vector<16x128xf32>
    %67 = vector.broadcast %53 : vector<1x128xf32> to vector<16x128xf32>
    %68 = arith.addf %66, %67 : vector<16x128xf32>
    %c6 = arith.constant 6 : index
    %c0_44 = arith.constant 0 : index
    %c0_45 = arith.constant 0 : index
    %69 = vector.load %arg1[%c6, %c0_44, %c0_45] : memref<12x128x128xbf16, #tpu.memory_space<vmem>>, vector<1x128x128xbf16>
    %70 = vector.shape_cast %69 : vector<1x128x128xbf16> to vector<128x128xbf16>
    %c7_46 = arith.constant 7 : index
    %c0_47 = arith.constant 0 : index
    %c0_48 = arith.constant 0 : index
    %71 = vector.load %arg1[%c7_46, %c0_47, %c0_48] : memref<12x128x128xbf16, #tpu.memory_space<vmem>>, vector<1x128x128xbf16>
    %72 = vector.shape_cast %71 : vector<1x128x128xbf16> to vector<128x128xbf16>
    %c12 = arith.constant 12 : index
    %c0_49 = arith.constant 0 : index
    %73 = vector.load %arg2[%c12, %c0_49] : memref<24x128xf32, #tpu.memory_space<vmem>>, vector<1x128xf32>
    %c13 = arith.constant 13 : index
    %c0_50 = arith.constant 0 : index
    %74 = vector.load %arg2[%c13, %c0_50] : memref<24x128xf32, #tpu.memory_space<vmem>>, vector<1x128xf32>
    %c15 = arith.constant 15 : index
    %c0_51 = arith.constant 0 : index
    %75 = vector.load %arg2[%c15, %c0_51] : memref<24x128xf32, #tpu.memory_space<vmem>>, vector<1x128xf32>
    %cst_52 = arith.constant dense<0.000000e+00> : vector<16x128xf32>
    %76 = tpu.matmul %0, %68, %cst_52 {dimension_numbers = #tpu.dot_dimension_numbers<[1], [0], [0], [1], [0, 0, 1, 1], [], []>} : vector<16x16xf32>, vector<16x128xf32>, vector<16x128xf32> -> vector<16x128xf32>
    %77 = arith.truncf %76 : vector<16x128xf32> to vector<16x128xbf16>
    %cst_53 = arith.constant dense<0.000000e+00> : vector<16x128xf32>
    %78 = tpu.matmul %77, %70, %cst_53 {dimension_numbers = #tpu.dot_dimension_numbers<[1], [0], [0], [1], [0, 0, 1, 1], [], []>} : vector<16x128xbf16>, vector<128x128xbf16>, vector<16x128xf32> -> vector<16x128xf32>
    %79 = vector.broadcast %73 : vector<1x128xf32> to vector<16x128xf32>
    %80 = arith.addf %78, %79 : vector<16x128xf32>
    %cst_54 = arith.constant 0.000000e+00 : f32
    %81 = vector.broadcast %cst_54 : f32 to vector<16x128xf32>
    %82 = arith.maximumf %80, %81 : vector<16x128xf32>
    %83 = arith.truncf %82 : vector<16x128xf32> to vector<16x128xbf16>
    %cst_55 = arith.constant dense<0.000000e+00> : vector<16x128xf32>
    %84 = tpu.matmul %83, %72, %cst_55 {dimension_numbers = #tpu.dot_dimension_numbers<[1], [0], [0], [1], [0, 0, 1, 1], [], []>} : vector<16x128xbf16>, vector<128x128xbf16>, vector<16x128xf32> -> vector<16x128xf32>
    %85 = vector.broadcast %74 : vector<1x128xf32> to vector<16x128xf32>
    %86 = arith.addf %84, %85 : vector<16x128xf32>
    %cst_56 = arith.constant 0.000000e+00 : f32
    %87 = vector.broadcast %cst_56 : f32 to vector<16x128xf32>
    %88 = arith.maximumf %86, %87 : vector<16x128xf32>
    %89 = vector.broadcast %75 : vector<1x128xf32> to vector<16x128xf32>
    %90 = arith.addf %88, %89 : vector<16x128xf32>
    %c8_57 = arith.constant 8 : index
    %c0_58 = arith.constant 0 : index
    %c0_59 = arith.constant 0 : index
    %91 = vector.load %arg1[%c8_57, %c0_58, %c0_59] : memref<12x128x128xbf16, #tpu.memory_space<vmem>>, vector<1x128x128xbf16>
    %92 = vector.shape_cast %91 : vector<1x128x128xbf16> to vector<128x128xbf16>
    %c9_60 = arith.constant 9 : index
    %c0_61 = arith.constant 0 : index
    %c0_62 = arith.constant 0 : index
    %93 = vector.load %arg1[%c9_60, %c0_61, %c0_62] : memref<12x128x128xbf16, #tpu.memory_space<vmem>>, vector<1x128x128xbf16>
    %94 = vector.shape_cast %93 : vector<1x128x128xbf16> to vector<128x128xbf16>
    %c16_63 = arith.constant 16 : index
    %c0_64 = arith.constant 0 : index
    %95 = vector.load %arg2[%c16_63, %c0_64] : memref<24x128xf32, #tpu.memory_space<vmem>>, vector<1x128xf32>
    %c17 = arith.constant 17 : index
    %c0_65 = arith.constant 0 : index
    %96 = vector.load %arg2[%c17, %c0_65] : memref<24x128xf32, #tpu.memory_space<vmem>>, vector<1x128xf32>
    %c19 = arith.constant 19 : index
    %c0_66 = arith.constant 0 : index
    %97 = vector.load %arg2[%c19, %c0_66] : memref<24x128xf32, #tpu.memory_space<vmem>>, vector<1x128xf32>
    %cst_67 = arith.constant dense<0.000000e+00> : vector<16x128xf32>
    %98 = tpu.matmul %0, %90, %cst_67 {dimension_numbers = #tpu.dot_dimension_numbers<[1], [0], [0], [1], [0, 0, 1, 1], [], []>} : vector<16x16xf32>, vector<16x128xf32>, vector<16x128xf32> -> vector<16x128xf32>
    %99 = arith.truncf %98 : vector<16x128xf32> to vector<16x128xbf16>
    %cst_68 = arith.constant dense<0.000000e+00> : vector<16x128xf32>
    %100 = tpu.matmul %99, %92, %cst_68 {dimension_numbers = #tpu.dot_dimension_numbers<[1], [0], [0], [1], [0, 0, 1, 1], [], []>} : vector<16x128xbf16>, vector<128x128xbf16>, vector<16x128xf32> -> vector<16x128xf32>
    %101 = vector.broadcast %95 : vector<1x128xf32> to vector<16x128xf32>
    %102 = arith.addf %100, %101 : vector<16x128xf32>
    %cst_69 = arith.constant 0.000000e+00 : f32
    %103 = vector.broadcast %cst_69 : f32 to vector<16x128xf32>
    %104 = arith.maximumf %102, %103 : vector<16x128xf32>
    %105 = arith.truncf %104 : vector<16x128xf32> to vector<16x128xbf16>
    %cst_70 = arith.constant dense<0.000000e+00> : vector<16x128xf32>
    %106 = tpu.matmul %105, %94, %cst_70 {dimension_numbers = #tpu.dot_dimension_numbers<[1], [0], [0], [1], [0, 0, 1, 1], [], []>} : vector<16x128xbf16>, vector<128x128xbf16>, vector<16x128xf32> -> vector<16x128xf32>
    %107 = vector.broadcast %96 : vector<1x128xf32> to vector<16x128xf32>
    %108 = arith.addf %106, %107 : vector<16x128xf32>
    %cst_71 = arith.constant 0.000000e+00 : f32
    %109 = vector.broadcast %cst_71 : f32 to vector<16x128xf32>
    %110 = arith.maximumf %108, %109 : vector<16x128xf32>
    %111 = vector.broadcast %97 : vector<1x128xf32> to vector<16x128xf32>
    %112 = arith.addf %110, %111 : vector<16x128xf32>
    %cst_72 = arith.constant dense<0.000000e+00> : vector<8x128xf32>
    %113 = tpu.matmul %1, %112, %cst_72 {dimension_numbers = #tpu.dot_dimension_numbers<[1], [0], [0], [1], [0, 0, 1, 1], [], []>} : vector<8x16xf32>, vector<16x128xf32>, vector<8x128xf32> -> vector<8x128xf32>
    %114 = arith.truncf %113 : vector<8x128xf32> to vector<8x128xbf16>
    %c10 = arith.constant 10 : index
    %c0_73 = arith.constant 0 : index
    %c0_74 = arith.constant 0 : index
    %115 = vector.load %arg1[%c10, %c0_73, %c0_74] : memref<12x128x128xbf16, #tpu.memory_space<vmem>>, vector<1x128x128xbf16>
    %116 = vector.shape_cast %115 : vector<1x128x128xbf16> to vector<128x128xbf16>
    %cst_75 = arith.constant dense<0.000000e+00> : vector<8x128xf32>
    %117 = tpu.matmul %114, %116, %cst_75 {dimension_numbers = #tpu.dot_dimension_numbers<[1], [0], [0], [1], [0, 0, 1, 1], [], []>} : vector<8x128xbf16>, vector<128x128xbf16>, vector<8x128xf32> -> vector<8x128xf32>
    %c20 = arith.constant 20 : index
    %c0_76 = arith.constant 0 : index
    %118 = vector.load %arg2[%c20, %c0_76] : memref<24x128xf32, #tpu.memory_space<vmem>>, vector<1x128xf32>
    %119 = vector.broadcast %118 : vector<1x128xf32> to vector<8x128xf32>
    %120 = arith.addf %117, %119 : vector<8x128xf32>
    %cst_77 = arith.constant 0.000000e+00 : f32
    %121 = vector.broadcast %cst_77 : f32 to vector<8x128xf32>
    %122 = arith.maximumf %120, %121 : vector<8x128xf32>
    %123 = arith.truncf %122 : vector<8x128xf32> to vector<8x128xbf16>
    %c11_78 = arith.constant 11 : index
    %c0_79 = arith.constant 0 : index
    %c0_80 = arith.constant 0 : index
    %124 = vector.load %arg1[%c11_78, %c0_79, %c0_80] : memref<12x128x128xbf16, #tpu.memory_space<vmem>>, vector<1x128x128xbf16>
    %125 = vector.shape_cast %124 : vector<1x128x128xbf16> to vector<128x128xbf16>
    %cst_81 = arith.constant dense<0.000000e+00> : vector<8x128xf32>
    %126 = tpu.matmul %123, %125, %cst_81 {dimension_numbers = #tpu.dot_dimension_numbers<[1], [0], [0], [1], [0, 0, 1, 1], [], []>} : vector<8x128xbf16>, vector<128x128xbf16>, vector<8x128xf32> -> vector<8x128xf32>
    %c21 = arith.constant 21 : index
    %c0_82 = arith.constant 0 : index
    %127 = vector.load %arg2[%c21, %c0_82] : memref<24x128xf32, #tpu.memory_space<vmem>>, vector<1x128xf32>
    %128 = vector.broadcast %127 : vector<1x128xf32> to vector<8x128xf32>
    %129 = arith.addf %126, %128 : vector<8x128xf32>
    %cst_83 = arith.constant dense<0xFF800000> : vector<8xf32>
    %130 = vector.multi_reduction <maximumf>, %129, %cst_83 [1] : vector<8x128xf32> to vector<8xf32>
    %131 = vector.shape_cast %130 : vector<8xf32> to vector<8x1xf32>
    %132 = vector.broadcast %131 : vector<8x1xf32> to vector<8x128xf32>
    %133 = arith.subf %129, %132 : vector<8x128xf32>
    %134 = math.exp %133 : vector<8x128xf32>
    %cst_84 = arith.constant dense<0.000000e+00> : vector<8xf32>
    %135 = vector.multi_reduction <add>, %134, %cst_84 [1] : vector<8x128xf32> to vector<8xf32>
    %136 = vector.shape_cast %135 : vector<8xf32> to vector<8x1xf32>
    %137 = math.log %136 : vector<8x1xf32>
    %138 = vector.broadcast %137 : vector<8x1xf32> to vector<8x128xf32>
    %139 = arith.subf %133, %138 : vector<8x128xf32>
    %c0_85 = arith.constant 0 : index
    %c0_86 = arith.constant 0 : index
    %140 = vector.load %arg3[%c0_85, %c0_86] : memref<8x128xf32, #tpu.memory_space<vmem>>, vector<8x128xf32>
    tpu.vector_store %arg3[%c0_85, %c0_86], %139 {strides = array<i32>} : memref<8x128xf32, #tpu.memory_space<vmem>>, vector<8x128xf32>,
    return
  }
}

</mosaic_0001>

<bundles_post_ra>
// kernel: _net_forward.1
= control target key start
LH: loop header
LB: loop body
LE: loop exit
PB: predicated region body
PF: predicated region fallthrough
CT: control target
= control target key end

     0   :  { %8 = vsyncpa [#allocation3], 0  ;;  %s2886_s0 = inlined_call_operand.hbm [shape: f32[40,128], index: 0, kind: input, shape index: {}]   ;;  %s2887_s1 = inlined_call_operand.hbm [shape: bf16[12,128,128], index: 1, kind: input, shape index: {}]   ;;  %s2888_s2 = inlined_call_operand.hbm [shape: f32[24,128], index: 2, kind: input, shape index: {}]   ;;  %s2889_s3 = inlined_call_operand.vmem [shape: f32[8,128], index: 3, kind: output, shape index: {}]  }
   0x1   :  { %9 = vsyncpa [#allocation5], 0  ;;  %s2671_s12 = smov [#allocation4]   ;;  %s2601_s16 = scalar_lea.hbm %s2887_s1, 12288 }
   0x2   :  { %s27_s13 = sshll.u32 %s2671_s12, 4  ;;  %p2602_p0 = scmp.ne.s32.totalorder %s2887_s1, %s2601_s16  ;;  %s28_s13 = int_to_ptr.vmem [resolvable:$true] %s27_s13 }
   0x3   :  { %p2605_p1 = scmp.lt.u32.totalorder %s2601_s16, %s2887_s1 }
   0x5   :  { %p2607_p2 = pnand %p2605_p1, %p2602_p0 }
   0x7   :  { %2610 = shalt.err (!%p2607_p2)
}
   0x8   :  { %s2611_s21 = scalar_lea.vmem %s28_s13, 12288  ;;  %p2616_p4 = scmp.lt.s32.totalorder %s28_s13, %s28_s13 }
   0x9   :  { %p2612_p3 = scmp.ne.s32.totalorder %s28_s13, %s2611_s21  ;;  %p2617_p5 = scmp.lt.s32.totalorder %s2611_s21, %s2611_s21 }
   0xb   :  { %p2618_p6 = por %p2617_p5, %p2616_p4 }
   0xd   :  { %p2619_p7 = pnand %p2618_p6, %p2612_p3 }
   0xf   :  { %2622 = shalt.err (!%p2619_p7)
}
  0x10   :  { %s2672_s22 = smov 64   ;;  %s2673_s23 = smov 4  }
  0x11   :  { %33 = dma.hbm_to_vmem [thread:$0]  %s2887_s1, 12288, %s28_s13, [#allocation5], %s2672_s22, %s2672_s22, %s2673_s23  }
  0x12   :  { %s2674_s26 = smov [#allocation2]   ;;  %s2623_s30 = scalar_lea.hbm %s2886_s0, 640 }
  0x13   :  { %s15_s27 = sshll.u32 %s2674_s26, 4  ;;  %p2624_p8 = scmp.ne.s32.totalorder %s2886_s0, %s2623_s30  ;;  %s16_s27 = int_to_ptr.vmem [resolvable:$true] %s15_s27 }
  0x14   :  { %p2627_p9 = scmp.lt.u32.totalorder %s2623_s30, %s2886_s0 }
  0x16   :  { %p2629_p10 = pnand %p2627_p9, %p2624_p8 }
  0x18   :  { %2632 = shalt.err (!%p2629_p10)
}
  0x19   :  { %s2633_s8 = scalar_lea.vmem %s16_s27, 640  ;;  %p2638_p12 = scmp.lt.s32.totalorder %s16_s27, %s16_s27 }
  0x1a   :  { %p2634_p11 = scmp.ne.s32.totalorder %s16_s27, %s2633_s8  ;;  %p2639_p13 = scmp.lt.s32.totalorder %s2633_s8, %s2633_s8 }
  0x1c   :  { %p2640_p0 = por %p2639_p13, %p2638_p12 }
  0x1e   :  { %p2641_p1 = pnand %p2640_p0, %p2634_p11 }
  0x20   :  { %2644 = shalt.err (!%p2641_p1)
}
  0x21   :  { %s2675_s1 = smov 128   ;;  %s2676_s9 = smov 8  }
  0x22   :  { %21 = dma.hbm_to_vmem [thread:$0]  %s2886_s0, 640, %s16_s27, [#allocation3], %s2675_s1, %s2675_s1, %s2676_s9  }
  0x23   :  { %s2677_s12 = smov [#allocation6]   ;;  %s2645_s16 = scalar_lea.hbm %s2888_s2, 384 }
  0x24   :  { %s39_s13 = sshll.u32 %s2677_s12, 4  ;;  %p2646_p2 = scmp.ne.s32.totalorder %s2888_s2, %s2645_s16  ;;  %s40_s13 = int_to_ptr.vmem [resolvable:$true] %s39_s13 }
  0x25   :  { %p2649_p3 = scmp.lt.u32.totalorder %s2645_s16, %s2888_s2 }
  0x27   :  { %p2651_p4 = pnand %p2649_p3, %p2646_p2 }
  0x29   :  { %2654 = shalt.err (!%p2651_p4)
}
  0x2a   :  { %s2655_s21 = scalar_lea.vmem %s40_s13, 384  ;;  %p2660_p6 = scmp.lt.s32.totalorder %s40_s13, %s40_s13 }
  0x2b   :  { %p2656_p5 = scmp.ne.s32.totalorder %s40_s13, %s2655_s21  ;;  %p2661_p7 = scmp.lt.s32.totalorder %s2655_s21, %s2655_s21 }
  0x2d   :  { %p2662_p8 = por %p2661_p7, %p2660_p6 }
  0x2f   :  { %p2663_p9 = pnand %p2662_p8, %p2656_p5 }
  0x31   :  { %2666 = shalt.err (!%p2663_p9)
}
  0x32   :  { %45 = dma.hbm_to_vmem [thread:$0]  %s2888_s2, 384, %s40_s13, [#allocation5], %s2675_s1, %s2675_s1, %s2676_s9  }
  0x33   :  { %2667 = dma.done.wait [#allocation3], 640  }
  0x34   :  { %2668 = vsyncadd [#allocation3], 4294966656 }
  0x35   :  { %2669 = dma.done.wait [#allocation5], 12672  }
  0x36   :  { %2670 = vsyncadd [#allocation5], 4294954624  ;;  %v2678_v0 = vmov 0.0   ;;  %vm97_vm0 = vcmask 130048   ;;  %v59_v1 = vld [vmem:[#allocation2 + $0x18] sm:$0xff]  ;;  %v60_v2 = vld [vmem:[#allocation2 + $0x20] sm:$0xff] }
  0x37   :  { %2192 = vmatprep.subr.bf16.mxu1 %v2678_v0  ;;  %v2738_v3 = vld [vmem:[#allocation2] sm:$0xff]  ;;  %v2467_v4 = vpack.c.bf16 %v60_v2, %v59_v1  ;;  %v2500_v5 = vld [vmem:[#allocation4] sm:$0xff]   ;;  %v2501_v7 = vld [vmem:[#allocation4 + $0x8] sm:$0xff]   ;;  %vm2679_vm1 = vmmov 0  }
  0x38   :  { %2189 = vmatprep.mubr.msk.f32.mxu0 %vm97_vm0, %v2738_v3  ;;  %v2742_v6 = vld [vmem:[#allocation2 + $0x8] sm:$0xff]  ;;  %2193 = vmatpush3.bf16.msra.mxu1 %v2500_v5  ;;  %v2502_v8 = vld [vmem:[#allocation4 + $0x10] sm:$0xff]   ;;  %v2503_v9 = vld [vmem:[#allocation4 + $0x18] sm:$0xff]  }
  0x39   :  { %2468 = vmatprep.subr.bf16.mxu0 %v2467_v4  ;;  %2194 = vmatprep.subr.bf16.mxu1 %v2678_v0  ;;  %v2504_v10 = vld [vmem:[#allocation4 + $0x20] sm:$0xff]   ;;  %v2505_v11 = vld [vmem:[#allocation4 + $0x28] sm:$0xff]   ;;  %v2506_v12 = vld [vmem:[#allocation4 + $0x30] sm:$0xff]  }
  0x3a   :  { %2470 = vmatpush3.bf16.msra.mxu0 %v2467_v4  ;;  %v2507_v13 = vld [vmem:[#allocation4 + $0x38] sm:$0xff]   ;;  %2208 = vmatprep.mubr.msk.bf16.mxu1 %vm2679_vm1, %v2678_v0  ;;  %v2508_v14 = vld [vmem:[#allocation4 + $0x40] sm:$0xff]   ;;  %v2509_v15 = vld [vmem:[#allocation4 + $0x48] sm:$0xff]  }
  0x3b   :  { %2212 = vmatprep.subr.bf16.mxu0 %v2678_v0  ;;  %v2510_v16 = vld [vmem:[#allocation4 + $0x50] sm:$0xff]   ;;  %v2511_v17 = vld [vmem:[#allocation4 + $0x58] sm:$0xff]   ;;  %v2512_v18 = vld [vmem:[#allocation4 + $0x60] sm:$0xff]  }
  0x3c   :  { %2195 = vmatpush3.bf16.msra.mxu1 %v2501_v7  ;;  %v2513_v19 = vld [vmem:[#allocation4 + $0x68] sm:$0xff]   ;;  %v2514_v23 = vld [vmem:[#allocation4 + $0x70] sm:$0xff]   ;;  %v2515_v24 = vld [vmem:[#allocation4 + $0x78] sm:$0xff]  }
  0x3d   :  { %2190 = vmatmul.mubr.msk.f32.vlgmr.msra.gmra.mrb[0].mxu0 %vm97_vm0, %v2742_v6  ;;  %2196 = vmatprep.subr.bf16.mxu1 %v2678_v0  ;;  %v1932_v25 = vld [vmem:[#allocation6] ss:$0 sm:$0xff]  ;;  %v2517_v36 = vld [vmem:[#allocation4 + $0x88] sm:$0xff]   ;;  %v2518_v37 = vld [vmem:[#allocation4 + $0x90] sm:$0xff]  }
  0x3e   :  { %2228 = vmatprep.mubr.msk.bf16.mxu0 %vm2679_vm1, %v2678_v0  ;;  %2213 = vmatpush3.bf16.msra.mxu0 %v2508_v14  ;;  %v2516_v35 = vld [vmem:[#allocation4 + $0x80] sm:$0xff]   ;;  %v2519_v38 = vld [vmem:[#allocation4 + $0x98] sm:$0xff]   ;;  %v2521_v40 = vld [vmem:[#allocation4 + $0xa8] sm:$0xff]  }
  0x3f   :  { %2214 = vmatprep.subr.bf16.mxu0 %v2678_v0  ;;  %v2520_v39 = vld [vmem:[#allocation4 + $0xa0] sm:$0xff]   ;;  %v2522_v41 = vld [vmem:[#allocation4 + $0xb0] sm:$0xff]   ;;  %v2523_v55 = vld [vmem:[#allocation4 + $0xb8] sm:$0xff]  }
  0x40   :  { %2197 = vmatpush3.bf16.msra.mxu1 %v2502_v8  ;;  %v1941_v42 = vld [vmem:[#allocation6 + $0x1] ss:$0 sm:$0xff]  ;;  %v1950_v50 = vld [vmem:[#allocation6 + $0x3] ss:$0 sm:$0xff]  ;;  %v2525_v57 = vld [vmem:[#allocation4 + $0xc8] sm:$0xff]  }
  0x41   :  { %2198 = vmatprep.subr.bf16.mxu1 %v2678_v0  ;;  %v2524_v56 = vld [vmem:[#allocation4 + $0xc0] sm:$0xff]   ;;  %v2526_v58 = vld [vmem:[#allocation4 + $0xd0] sm:$0xff]   ;;  %v2527_v59 = vld [vmem:[#allocation4 + $0xd8] sm:$0xff]  }
  0x42   :  { %2215 = vmatpush3.bf16.msra.mxu0 %v2509_v15  ;;  %v2528_v60 = vld [vmem:[#allocation4 + $0xe0] sm:$0xff]   ;;  %v2529_v61 = vld [vmem:[#allocation4 + $0xe8] sm:$0xff]   ;;  %v2530_v2 = vld [vmem:[#allocation4 + $0xf0] sm:$0xff]  }
  0x43   :  { %2216 = vmatprep.subr.bf16.mxu0 %v2678_v0  ;;  %v2531_v4 = vld [vmem:[#allocation4 + $0xf8] sm:$0xff]   ;;  %v1953_v5 = vld [vmem:[#allocation6 + $0x4] ss:$0 sm:$0xff] }
  0x44   :  { %2199 = vmatpush3.bf16.msra.mxu1 %v2503_v9 }
  0x45   :  { %2200 = vmatprep.subr.bf16.mxu1 %v2678_v0 }
  0x46   :  { %2217 = vmatpush3.bf16.msra.mxu0 %v2510_v16  ;;  %v2532_v16 = vld [vmem:[#allocation4 + $0x100] sm:$0xff]  }
  0x47   :  { %2218 = vmatprep.subr.bf16.mxu0 %v2678_v0 }
  0x48   :  { %2201 = vmatpush3.bf16.msra.mxu1 %v2504_v10 }
  0x49   :  { %2202 = vmatprep.subr.bf16.mxu1 %v2678_v0 }
  0x4a   :  { %2219 = vmatpush3.bf16.msra.mxu0 %v2511_v17  ;;  %v2533_v17 = vld [vmem:[#allocation4 + $0x108] sm:$0xff]  }
  0x4b   :  { %2220 = vmatprep.subr.bf16.mxu0 %v2678_v0 }
  0x4c   :  { %2203 = vmatpush3.bf16.msra.mxu1 %v2505_v11 }
  0x4d   :  { %2204 = vmatprep.subr.bf16.mxu1 %v2678_v0 }
  0x4e   :  { %2221 = vmatpush3.bf16.msra.mxu0 %v2512_v18  ;;  %v2534_v18 = vld [vmem:[#allocation4 + $0x110] sm:$0xff]  }
  0x4f   :  { %2222 = vmatprep.subr.bf16.mxu0 %v2678_v0 }
  0x50   :  { %2205 = vmatpush3.bf16.msra.mxu1 %v2506_v12 }
  0x51   :  { %2206 = vmatprep.subr.bf16.mxu1 %v2678_v0 }
  0x52   :  { %2223 = vmatpush3.bf16.msra.mxu0 %v2513_v19  ;;  %v2535_v19 = vld [vmem:[#allocation4 + $0x118] sm:$0xff]  }
  0x53   :  { %2224 = vmatprep.subr.bf16.mxu0 %v2678_v0 }
  0x54   :  { %2207 = vmatpush3.bf16.msra.mxu1 %v2507_v13 }
  0x56   :  { %2225 = vmatpush3.bf16.msra.mxu0 %v2514_v23  ;;  %v1962_v23 = vld [vmem:[#allocation6 + $0x5] ss:$0 sm:$0xff] }
  0x57   :  { %2226 = vmatprep.subr.bf16.mxu0 %v2678_v0 }
  0x5a   :  { %2227 = vmatpush3.bf16.msra.mxu0 %v2515_v24 }
  0x5b   :  { %2239 = vmatprep.subr.bf16.mxu0 %v2678_v0 }
 0x110   :  { %v2191_v20 = vpop.f32.mrb[0].mxu0 }
 0x111   :  { %v170_v21 = vpop.f32.mrb[1].mxu0 }
 0x112   :  { %v179_v22 = vpack.c.bf16 %v2191_v20, %v170_v21  ;;  %v2536_v20 = vld [vmem:[#allocation4 + $0x120] sm:$0xff]   ;;  %v2537_v21 = vld [vmem:[#allocation4 + $0x128] sm:$0xff]  }
 0x114   :  { %2209 = vmatmul.mubr.bf16.vlgmr.msra.gmra.mrb[0].mxu1 %v179_v22  ;;  %v2538_v22 = vld [vmem:[#allocation4 + $0x130] sm:$0xff]  }
 0x115   :  { %2236 = vmatprep.mubr.msk.f32.mxu1 %vm97_vm0, %v2738_v3 }
 0x1e7   :  { %v266_v26 = vpop.f32.mrb[0].mxu1 }
 0x1e8   :  { %v267_v27 = vadd.f32 %v1932_v25, %v266_v26  ;;  %v2210_v28 = vpop.f32.mrb[1].mxu1 }
 0x1e9   :  { %v269_v29 = vpop.f32.mrb[2].mxu1 }
 0x1ea   :  { %v270_v30 = vadd.f32 %v1932_v25, %v269_v29  ;;  %v2211_v31 = vpop.f32.mrb[3].mxu1  ;;  %v273_v32 = vmax.f32 %v267_v27, 0.0 }
 0x1eb   :  { %v1971_v31 = vld [vmem:[#allocation6 + $0x7] ss:$0 sm:$0xff] }
 0x1ec   :  { %v274_v33 = vmax.f32 %v270_v30, 0.0 }
 0x1ee   :  { %v275_v34 = vpack.c.bf16 %v274_v33, %v273_v32 }
 0x1f0   :  { %2229 = vmatmul.mubr.bf16.vlgmr.msra.gmra.mrb[4].mxu0 %v275_v34 }
 0x1f1   :  { %2255 = vmatprep.mubr.msk.bf16.mxu0 %vm2679_vm1, %v2678_v0  ;;  %2240 = vmatpush3.bf16.msra.mxu0 %v2516_v35 }
 0x1f2   :  { %2241 = vmatprep.subr.bf16.mxu0 %v2678_v0 }
 0x1f5   :  { %2242 = vmatpush3.bf16.msra.mxu0 %v2517_v36  ;;  %v2539_v36 = vld [vmem:[#allocation4 + $0x138] sm:$0xff]  }
 0x1f6   :  { %2243 = vmatprep.subr.bf16.mxu0 %v2678_v0 }
 0x1f9   :  { %2244 = vmatpush3.bf16.msra.mxu0 %v2518_v37  ;;  %v2540_v37 = vld [vmem:[#allocation4 + $0x140] sm:$0xff]  }
 0x1fa   :  { %2245 = vmatprep.subr.bf16.mxu0 %v2678_v0 }
 0x1fd   :  { %2246 = vmatpush3.bf16.msra.mxu0 %v2519_v38  ;;  %v2541_v38 = vld [vmem:[#allocation4 + $0x148] sm:$0xff]  }
 0x1fe   :  { %2247 = vmatprep.subr.bf16.mxu0 %v2678_v0 }
 0x201   :  { %2248 = vmatpush3.bf16.msra.mxu0 %v2520_v39  ;;  %v2542_v39 = vld [vmem:[#allocation4 + $0x150] sm:$0xff]  }
 0x202   :  { %2249 = vmatprep.subr.bf16.mxu0 %v2678_v0 }
 0x205   :  { %2250 = vmatpush3.bf16.msra.mxu0 %v2521_v40  ;;  %v2543_v40 = vld [vmem:[#allocation4 + $0x158] sm:$0xff]  }
 0x206   :  { %2251 = vmatprep.subr.bf16.mxu0 %v2678_v0 }
 0x209   :  { %2252 = vmatpush3.bf16.msra.mxu0 %v2522_v41  ;;  %v2544_v41 = vld [vmem:[#allocation4 + $0x160] sm:$0xff]  }
 0x20a   :  { %2253 = vmatprep.subr.bf16.mxu0 %v2678_v0 }
 0x20d   :  { %2254 = vmatpush3.bf16.msra.mxu0 %v2523_v55 }
 0x2c3   :  { %v362_v43 = vpop.f32.mrb[4].mxu0 }
 0x2c4   :  { %v363_v44 = vadd.f32 %v1941_v42, %v362_v43  ;;  %v2230_v45 = vpop.f32.mrb[5].mxu0 }
 0x2c5   :  { %v365_v46 = vpop.f32.mrb[6].mxu0 }
 0x2c6   :  { %v369_v47 = vmax.f32 %v363_v44, 0.0  ;;  %v366_v48 = vadd.f32 %v1941_v42, %v365_v46  ;;  %v2231_v49 = vpop.f32.mrb[7].mxu0  ;;  %v2545_v42 = vld [vmem:[#allocation4 + $0x168] sm:$0xff]   ;;  %v2546_v46 = vld [vmem:[#allocation4 + $0x170] sm:$0xff]  }
 0x2c8   :  { %v370_v51 = vmax.f32 %v366_v48, 0.0  ;;  %v375_v52 = vadd.f32 %v1950_v50, %v369_v47  ;;  %v2547_v47 = vld [vmem:[#allocation4 + $0x178] sm:$0xff]   ;;  %v1974_v48 = vld [vmem:[#allocation6 + $0x8] ss:$0 sm:$0xff] }
 0x2ca   :  { %v376_v53 = vadd.f32 %v1950_v50, %v370_v51 }
 0x2cc   :  { %v2471_v54 = vpack.c.bf16 %v376_v53, %v375_v52 }
 0x2ce   :  { %2472 = vmatprep.subr.bf16.mxu1 %v2471_v54 }
 0x2cf   :  { %2474 = vmatpush3.bf16.msra.mxu1 %v2471_v54 }
 0x2d0   :  { %2259 = vmatprep.subr.bf16.mxu1 %v2678_v0 }
 0x2d2   :  { %2237 = vmatmul.mubr.msk.f32.vlgmr.msra.gmra.mrb[4].mxu1 %vm97_vm0, %v2742_v6 }
 0x2d3   :  { %2275 = vmatprep.mubr.msk.bf16.mxu1 %vm2679_vm1, %v2678_v0  ;;  %2260 = vmatpush3.bf16.msra.mxu1 %v2524_v56 }
 0x2d4   :  { %2261 = vmatprep.subr.bf16.mxu1 %v2678_v0 }
 0x2d7   :  { %2262 = vmatpush3.bf16.msra.mxu1 %v2525_v57 }
 0x2d8   :  { %2263 = vmatprep.subr.bf16.mxu1 %v2678_v0 }
 0x2db   :  { %2264 = vmatpush3.bf16.msra.mxu1 %v2526_v58  ;;  %v2548_v58 = vld [vmem:[#allocation4 + $0x180] sm:$0xff]  }
 0x2dc   :  { %2265 = vmatprep.subr.bf16.mxu1 %v2678_v0 }
 0x2df   :  { %2266 = vmatpush3.bf16.msra.mxu1 %v2527_v59  ;;  %v2549_v59 = vld [vmem:[#allocation4 + $0x188] sm:$0xff]  }
 0x2e0   :  { %2267 = vmatprep.subr.bf16.mxu1 %v2678_v0 }
 0x2e3   :  { %2268 = vmatpush3.bf16.msra.mxu1 %v2528_v60  ;;  %v2550_v60 = vld [vmem:[#allocation4 + $0x190] sm:$0xff]  }
 0x2e4   :  { %2269 = vmatprep.subr.bf16.mxu1 %v2678_v0 }
 0x2e7   :  { %2270 = vmatpush3.bf16.msra.mxu1 %v2529_v61  ;;  %v2551_v61 = vld [vmem:[#allocation4 + $0x198] sm:$0xff]  }
 0x2e8   :  { %2271 = vmatprep.subr.bf16.mxu1 %v2678_v0 }
 0x2eb   :  { %2272 = vmatpush3.bf16.msra.mxu1 %v2530_v2  ;;  %v1983_v2 = vld [vmem:[#allocation6 + $0x9] ss:$0 sm:$0xff] }
 0x2ec   :  { %2273 = vmatprep.subr.bf16.mxu1 %v2678_v0 }
 0x2ef   :  { %2274 = vmatpush3.bf16.msra.mxu1 %v2531_v4 }
 0x2f0   :  { %2286 = vmatprep.subr.bf16.mxu1 %v2678_v0 }
 0x3a5   :  { %v2238_v62 = vpop.f32.mrb[4].mxu1 }
 0x3a6   :  { %v480_v63 = vpop.f32.mrb[5].mxu1 }
 0x3a7   :  { %v489_v1 = vpack.c.bf16 %v2238_v62, %v480_v63  ;;  %v2552_v62 = vld [vmem:[#allocation4 + $0x1a0] sm:$0xff]   ;;  %v2553_v63 = vld [vmem:[#allocation4 + $0x1a8] sm:$0xff]  }
 0x3a9   :  { %2256 = vmatmul.mubr.bf16.vlgmr.msra.gmra.mrb[8].mxu0 %v489_v1  ;;  %v2554_v1 = vld [vmem:[#allocation4 + $0x1b0] sm:$0xff]  }
 0x3aa   :  { %2283 = vmatprep.mubr.msk.f32.mxu0 %vm97_vm0, %v2738_v3 }
 0x47c   :  { %v576_v7 = vpop.f32.mrb[8].mxu0 }
 0x47d   :  { %v577_v8 = vadd.f32 %v1953_v5, %v576_v7  ;;  %v2257_v9 = vpop.f32.mrb[9].mxu0 }
 0x47e   :  { %v579_v10 = vpop.f32.mrb[10].mxu0 }
 0x47f   :  { %v580_v11 = vadd.f32 %v1953_v5, %v579_v10  ;;  %v2258_v12 = vpop.f32.mrb[11].mxu0  ;;  %v583_v13 = vmax.f32 %v577_v8, 0.0 }
 0x480   :  { %v1992_v12 = vld [vmem:[#allocation6 + $0xb] ss:$0 sm:$0xff] }
 0x481   :  { %v584_v14 = vmax.f32 %v580_v11, 0.0 }
 0x483   :  { %v585_v15 = vpack.c.bf16 %v584_v14, %v583_v13 }
 0x485   :  { %2276 = vmatmul.mubr.bf16.vlgmr.msra.gmra.mrb[8].mxu1 %v585_v15 }
 0x486   :  { %2302 = vmatprep.mubr.msk.bf16.mxu1 %vm2679_vm1, %v2678_v0  ;;  %2287 = vmatpush3.bf16.msra.mxu1 %v2532_v16 }
 0x487   :  { %2288 = vmatprep.subr.bf16.mxu1 %v2678_v0 }
 0x48a   :  { %2289 = vmatpush3.bf16.msra.mxu1 %v2533_v17  ;;  %v2555_v17 = vld [vmem:[#allocation4 + $0x1b8] sm:$0xff]  }
 0x48b   :  { %2290 = vmatprep.subr.bf16.mxu1 %v2678_v0 }
 0x48e   :  { %2291 = vmatpush3.bf16.msra.mxu1 %v2534_v18  ;;  %v2556_v18 = vld [vmem:[#allocation4 + $0x1c0] sm:$0xff]  }
 0x48f   :  { %2292 = vmatprep.subr.bf16.mxu1 %v2678_v0 }
 0x492   :  { %2293 = vmatpush3.bf16.msra.mxu1 %v2535_v19  ;;  %v2557_v19 = vld [vmem:[#allocation4 + $0x1c8] sm:$0xff]  }
 0x493   :  { %2294 = vmatprep.subr.bf16.mxu1 %v2678_v0 }
 0x496   :  { %2295 = vmatpush3.bf16.msra.mxu1 %v2536_v20  ;;  %v2558_v20 = vld [vmem:[#allocation4 + $0x1d0] sm:$0xff]  }
 0x497   :  { %2296 = vmatprep.subr.bf16.mxu1 %v2678_v0 }
 0x49a   :  { %2297 = vmatpush3.bf16.msra.mxu1 %v2537_v21  ;;  %v2559_v21 = vld [vmem:[#allocation4 + $0x1d8] sm:$0xff]  }
 0x49b   :  { %2298 = vmatprep.subr.bf16.mxu1 %v2678_v0 }
 0x49e   :  { %2299 = vmatpush3.bf16.msra.mxu1 %v2538_v22  ;;  %v2561_v22 = vld [vmem:[#allocation4 + $0x1e8] sm:$0xff]  }
 0x49f   :  { %2300 = vmatprep.subr.bf16.mxu1 %v2678_v0 }
 0x4a2   :  { %2301 = vmatpush3.bf16.msra.mxu1 %v2539_v36 }
 0x558   :  { %v672_v24 = vpop.f32.mrb[8].mxu1 }
 0x559   :  { %v673_v25 = vadd.f32 %v1962_v23, %v672_v24  ;;  %v2277_v26 = vpop.f32.mrb[9].mxu1 }
 0x55a   :  { %v675_v27 = vpop.f32.mrb[10].mxu1  ;;  %v2562_v26 = vld [vmem:[#allocation4 + $0x1f0] sm:$0xff]  }
 0x55b   :  { %v679_v28 = vmax.f32 %v673_v25, 0.0  ;;  %v676_v29 = vadd.f32 %v1962_v23, %v675_v27  ;;  %v2278_v30 = vpop.f32.mrb[11].mxu1  ;;  %v2563_v27 = vld [vmem:[#allocation4 + $0x1f8] sm:$0xff]  }
 0x55d   :  { %v680_v32 = vmax.f32 %v676_v29, 0.0  ;;  %v685_v33 = vadd.f32 %v1971_v31, %v679_v28  ;;  %v1995_v28 = vld [vmem:[#allocation6 + $0xc] ss:$0 sm:$0xff] }
 0x55f   :  { %v686_v34 = vadd.f32 %v1971_v31, %v680_v32 }
 0x561   :  { %v2475_v35 = vpack.c.bf16 %v686_v34, %v685_v33 }
 0x563   :  { %2476 = vmatprep.subr.bf16.mxu0 %v2475_v35 }
 0x564   :  { %2478 = vmatpush3.bf16.msra.mxu0 %v2475_v35 }
 0x565   :  { %2306 = vmatprep.subr.bf16.mxu0 %v2678_v0 }
 0x567   :  { %2284 = vmatmul.mubr.msk.f32.vlgmr.msra.gmra.mrb[2].mxu0 %vm97_vm0, %v2742_v6 }
 0x568   :  { %2322 = vmatprep.mubr.msk.bf16.mxu0 %vm2679_vm1, %v2678_v0  ;;  %2307 = vmatpush3.bf16.msra.mxu0 %v2540_v37 }
 0x569   :  { %2308 = vmatprep.subr.bf16.mxu0 %v2678_v0 }
 0x56c   :  { %2309 = vmatpush3.bf16.msra.mxu0 %v2541_v38  ;;  %v2565_v38 = vld [vmem:[#allocation4 + $0x208] sm:$0xff]  }
 0x56d   :  { %2310 = vmatprep.subr.bf16.mxu0 %v2678_v0 }
 0x570   :  { %2311 = vmatpush3.bf16.msra.mxu0 %v2542_v39  ;;  %v2566_v39 = vld [vmem:[#allocation4 + $0x210] sm:$0xff]  }
 0x571   :  { %2312 = vmatprep.subr.bf16.mxu0 %v2678_v0 }
 0x574   :  { %2313 = vmatpush3.bf16.msra.mxu0 %v2543_v40  ;;  %v2567_v40 = vld [vmem:[#allocation4 + $0x218] sm:$0xff]  }
 0x575   :  { %2314 = vmatprep.subr.bf16.mxu0 %v2678_v0 }
 0x578   :  { %2315 = vmatpush3.bf16.msra.mxu0 %v2544_v41  ;;  %v2568_v41 = vld [vmem:[#allocation4 + $0x220] sm:$0xff]  }
 0x579   :  { %2316 = vmatprep.subr.bf16.mxu0 %v2678_v0 }
 0x57c   :  { %2317 = vmatpush3.bf16.msra.mxu0 %v2545_v42  ;;  %v2569_v42 = vld [vmem:[#allocation4 + $0x228] sm:$0xff]  }
 0x57d   :  { %2318 = vmatprep.subr.bf16.mxu0 %v2678_v0 }
 0x580   :  { %2319 = vmatpush3.bf16.msra.mxu0 %v2546_v46 }
 0x581   :  { %2320 = vmatprep.subr.bf16.mxu0 %v2678_v0 }
 0x584   :  { %2321 = vmatpush3.bf16.msra.mxu0 %v2547_v47 }
 0x585   :  { %2333 = vmatprep.subr.bf16.mxu0 %v2678_v0 }
 0x63a   :  { %v2285_v43 = vpop.f32.mrb[2].mxu0 }
 0x63b   :  { %v790_v44 = vpop.f32.mrb[3].mxu0 }
 0x63c   :  { %v799_v45 = vpack.c.bf16 %v2285_v43, %v790_v44  ;;  %v2570_v43 = vld [vmem:[#allocation4 + $0x230] sm:$0xff]   ;;  %v2004_v44 = vld [vmem:[#allocation6 + $0xd] ss:$0 sm:$0xff] }
 0x63e   :  { %2303 = vmatmul.mubr.bf16.vlgmr.msra.gmra.mrb[12].mxu1 %v799_v45 }
 0x63f   :  { %2330 = vmatprep.mubr.msk.f32.mxu1 %vm97_vm0, %v2738_v3 }
 0x711   :  { %v886_v49 = vpop.f32.mrb[12].mxu1 }
 0x712   :  { %v887_v50 = vadd.f32 %v1974_v48, %v886_v49  ;;  %v2304_v51 = vpop.f32.mrb[13].mxu1 }
 0x713   :  { %v889_v52 = vpop.f32.mrb[14].mxu1 }
 0x714   :  { %v890_v53 = vadd.f32 %v1974_v48, %v889_v52  ;;  %v2305_v54 = vpop.f32.mrb[15].mxu1  ;;  %v893_v55 = vmax.f32 %v887_v50, 0.0  ;;  %v2013_v52 = vld [vmem:[#allocation6 + $0xf] ss:$0 sm:$0xff] }
 0x716   :  { %v894_v56 = vmax.f32 %v890_v53, 0.0 }
 0x718   :  { %v895_v57 = vpack.c.bf16 %v894_v56, %v893_v55 }
 0x71a   :  { %2323 = vmatmul.mubr.bf16.vlgmr.msra.gmra.mrb[12].mxu0 %v895_v57  ;;  %v2600_v57 = vld [vmem:[#allocation2 + $0x8] sm:$0xff] }
 0x71b   :  { %2349 = vmatprep.mubr.msk.bf16.mxu0 %vm2679_vm1, %v2678_v0  ;;  %2334 = vmatpush3.bf16.msra.mxu0 %v2548_v58  ;;  %v2571_v58 = vld [vmem:[#allocation4 + $0x238] sm:$0xff]  }
 0x71c   :  { %2335 = vmatprep.subr.bf16.mxu0 %v2678_v0 }
 0x71f   :  { %2336 = vmatpush3.bf16.msra.mxu0 %v2549_v59  ;;  %v2572_v59 = vld [vmem:[#allocation4 + $0x240] sm:$0xff]  }
 0x720   :  { %2337 = vmatprep.subr.bf16.mxu0 %v2678_v0 }
 0x723   :  { %2338 = vmatpush3.bf16.msra.mxu0 %v2550_v60  ;;  %v2573_v60 = vld [vmem:[#allocation4 + $0x248] sm:$0xff]  }
 0x724   :  { %2339 = vmatprep.subr.bf16.mxu0 %v2678_v0 }
 0x727   :  { %2340 = vmatpush3.bf16.msra.mxu0 %v2551_v61  ;;  %v2574_v61 = vld [vmem:[#allocation4 + $0x250] sm:$0xff]  }
 0x728   :  { %2341 = vmatprep.subr.bf16.mxu0 %v2678_v0 }
 0x72b   :  { %2342 = vmatpush3.bf16.msra.mxu0 %v2552_v62  ;;  %v2575_v62 = vld [vmem:[#allocation4 + $0x258] sm:$0xff]  }
 0x72c   :  { %2343 = vmatprep.subr.bf16.mxu0 %v2678_v0 }
 0x72f   :  { %2344 = vmatpush3.bf16.msra.mxu0 %v2553_v63  ;;  %v2576_v63 = vld [vmem:[#allocation4 + $0x260] sm:$0xff]  }
 0x730   :  { %2345 = vmatprep.subr.bf16.mxu0 %v2678_v0 }
 0x733   :  { %2346 = vmatpush3.bf16.msra.mxu0 %v2554_v1  ;;  %v2577_v1 = vld [vmem:[#allocation4 + $0x268] sm:$0xff]  }
 0x734   :  { %2347 = vmatprep.subr.bf16.mxu0 %v2678_v0 }
 0x737   :  { %2348 = vmatpush3.bf16.msra.mxu0 %v2555_v17 }
 0x7ed   :  { %v982_v4 = vpop.f32.mrb[12].mxu0 }
 0x7ee   :  { %v983_v5 = vadd.f32 %v1983_v2, %v982_v4  ;;  %v2324_v7 = vpop.f32.mrb[13].mxu0 }
 0x7ef   :  { %v985_v8 = vpop.f32.mrb[14].mxu0  ;;  %v2578_v7 = vld [vmem:[#allocation4 + $0x270] sm:$0xff]  }
 0x7f0   :  { %v989_v9 = vmax.f32 %v983_v5, 0.0  ;;  %v986_v10 = vadd.f32 %v1983_v2, %v985_v8  ;;  %v2325_v11 = vpop.f32.mrb[15].mxu0  ;;  %v2579_v8 = vld [vmem:[#allocation4 + $0x278] sm:$0xff]  }
 0x7f2   :  { %v990_v13 = vmax.f32 %v986_v10, 0.0  ;;  %v995_v14 = vadd.f32 %v1992_v12, %v989_v9  ;;  %v2016_v9 = vld [vmem:[#allocation6 + $0x10] ss:$0 sm:$0xff] }
 0x7f4   :  { %v996_v15 = vadd.f32 %v1992_v12, %v990_v13 }
 0x7f6   :  { %v2479_v16 = vpack.c.bf16 %v996_v15, %v995_v14 }
 0x7f8   :  { %2480 = vmatprep.subr.bf16.mxu1 %v2479_v16 }
 0x7f9   :  { %2482 = vmatpush3.bf16.msra.mxu1 %v2479_v16 }
 0x7fa   :  { %2353 = vmatprep.subr.bf16.mxu1 %v2678_v0 }
 0x7fc   :  { %2331 = vmatmul.mubr.msk.f32.vlgmr.msra.gmra.mrb[6].mxu1 %vm97_vm0, %v2742_v6  ;;  %v2560_v6 = vld [vmem:[#allocation4 + $0x1e0] sm:$0xff]  }
 0x7fd   :  { %2369 = vmatprep.mubr.msk.bf16.mxu1 %vm2679_vm1, %v2678_v0  ;;  %2354 = vmatpush3.bf16.msra.mxu1 %v2556_v18 }
 0x7fe   :  { %2355 = vmatprep.subr.bf16.mxu1 %v2678_v0 }
 0x801   :  { %2356 = vmatpush3.bf16.msra.mxu1 %v2557_v19  ;;  %v2680_v19 = vmov 0.0|0.0  }
 0x802   :  { %2357 = vmatprep.subr.bf16.mxu1 %v2678_v0 }
 0x805   :  { %2358 = vmatpush3.bf16.msra.mxu1 %v2558_v20  ;;  %v2580_v20 = vld [vmem:[#allocation4 + $0x280] sm:$0xff]  }
 0x806   :  { %2359 = vmatprep.subr.bf16.mxu1 %v2678_v0 }
 0x809   :  { %2360 = vmatpush3.bf16.msra.mxu1 %v2559_v21  ;;  %v2581_v21 = vld [vmem:[#allocation4 + $0x288] sm:$0xff]  }
 0x80a   :  { %2361 = vmatprep.subr.bf16.mxu1 %v2678_v0 }
 0x80d   :  { %2362 = vmatpush3.bf16.msra.mxu1 %v2560_v6  ;;  %v2582_v6 = vld [vmem:[#allocation4 + $0x290] sm:$0xff]  }
 0x80e   :  { %2363 = vmatprep.subr.bf16.mxu1 %v2678_v0 }
 0x811   :  { %2364 = vmatpush3.bf16.msra.mxu1 %v2561_v22  ;;  %v2583_v22 = vld [vmem:[#allocation4 + $0x298] sm:$0xff]  }
 0x812   :  { %2365 = vmatprep.subr.bf16.mxu1 %v2678_v0 }
 0x815   :  { %2366 = vmatpush3.bf16.msra.mxu1 %v2562_v26  ;;  %v2025_v26 = vld [vmem:[#allocation6 + $0x11] ss:$0 sm:$0xff] }
 0x816   :  { %2367 = vmatprep.subr.bf16.mxu1 %v2678_v0 }
 0x819   :  { %2368 = vmatpush3.bf16.msra.mxu1 %v2563_v27 }
 0x81a   :  { %2380 = vmatprep.subr.bf16.mxu1 %v2678_v0 }
 0x8cf   :  { %v2332_v23 = vpop.f32.mrb[6].mxu1 }
 0x8d0   :  { %v1100_v24 = vpop.f32.mrb[7].mxu1 }
 0x8d1   :  { %v1109_v25 = vpack.c.bf16 %v2332_v23, %v1100_v24  ;;  %v2584_v23 = vld [vmem:[#allocation4 + $0x2a0] sm:$0xff]   ;;  %v2585_v24 = vld [vmem:[#allocation4 + $0x2a8] sm:$0xff]  }
 0x8d3   :  { %2350 = vmatmul.mubr.bf16.vlgmr.msra.gmra.mrb[16].mxu0 %v1109_v25  ;;  %v2586_v25 = vld [vmem:[#allocation4 + $0x2b0] sm:$0xff]  }
 0x8d4   :  { %2377 = vmatprep.mubr.msk.f32.mxu0 %vm97_vm0, %v2738_v3  ;;  %v2564_v3 = vld [vmem:[#allocation4 + $0x200] sm:$0xff]  }
 0x9a6   :  { %v1196_v29 = vpop.f32.mrb[16].mxu0 }
 0x9a7   :  { %v1197_v30 = vadd.f32 %v1995_v28, %v1196_v29  ;;  %v2351_v31 = vpop.f32.mrb[17].mxu0 }
 0x9a8   :  { %v1199_v32 = vpop.f32.mrb[18].mxu0 }
 0x9a9   :  { %v1200_v33 = vadd.f32 %v1995_v28, %v1199_v32  ;;  %v2352_v34 = vpop.f32.mrb[19].mxu0  ;;  %v1203_v35 = vmax.f32 %v1197_v30, 0.0 }
 0x9aa   :  { %v2034_v34 = vld [vmem:[#allocation6 + $0x13] ss:$0 sm:$0xff] }
 0x9ab   :  { %v1204_v36 = vmax.f32 %v1200_v33, 0.0 }
 0x9ad   :  { %v1205_v37 = vpack.c.bf16 %v1204_v36, %v1203_v35 }
 0x9af   :  { %2370 = vmatmul.mubr.bf16.vlgmr.msra.gmra.mrb[16].mxu1 %v1205_v37 }
 0x9b0   :  { %2396 = vmatprep.mubr.msk.bf16.mxu1 %vm2679_vm1, %v2678_v0  ;;  %2381 = vmatpush3.bf16.msra.mxu1 %v2564_v3 }
 0x9b1   :  { %2382 = vmatprep.subr.bf16.mxu1 %v2678_v0 }
 0x9b4   :  { %2383 = vmatpush3.bf16.msra.mxu1 %v2565_v38  ;;  %v58_v38 = vld [vmem:[#allocation2 + $0x10] sm:$0xff] }
 0x9b5   :  { %2384 = vmatprep.subr.bf16.mxu1 %v2678_v0 }
 0x9b8   :  { %2385 = vmatpush3.bf16.msra.mxu1 %v2566_v39  ;;  %v2587_v39 = vld [vmem:[#allocation4 + $0x2b8] sm:$0xff]  }
 0x9b9   :  { %2386 = vmatprep.subr.bf16.mxu1 %v2678_v0 }
 0x9bc   :  { %2387 = vmatpush3.bf16.msra.mxu1 %v2567_v40  ;;  %v2588_v40 = vld [vmem:[#allocation4 + $0x2c0] sm:$0xff]  }
 0x9bd   :  { %2388 = vmatprep.subr.bf16.mxu1 %v2678_v0 }
 0x9c0   :  { %2389 = vmatpush3.bf16.msra.mxu1 %v2568_v41  ;;  %v2589_v41 = vld [vmem:[#allocation4 + $0x2c8] sm:$0xff]  }
 0x9c1   :  { %2390 = vmatprep.subr.bf16.mxu1 %v2678_v0 }
 0x9c4   :  { %2391 = vmatpush3.bf16.msra.mxu1 %v2569_v42  ;;  %v2590_v42 = vld [vmem:[#allocation4 + $0x2d0] sm:$0xff]  }
 0x9c5   :  { %2392 = vmatprep.subr.bf16.mxu1 %v2678_v0 }
 0x9c8   :  { %2393 = vmatpush3.bf16.msra.mxu1 %v2570_v43  ;;  %v2591_v43 = vld [vmem:[#allocation4 + $0x2d8] sm:$0xff]  }
 0x9c9   :  { %2394 = vmatprep.subr.bf16.mxu1 %v2678_v0 }
 0x9cc   :  { %2395 = vmatpush3.bf16.msra.mxu1 %v2571_v58 }
 0x9cd   :  { %2487 = vmatprep.subr.bf16.mxu1 %v2680_v19 }
 0xa82   :  { %v1292_v45 = vpop.f32.mrb[16].mxu1 }
 0xa83   :  { %v1293_v46 = vadd.f32 %v2004_v44, %v1292_v45  ;;  %v2371_v47 = vpop.f32.mrb[17].mxu1  ;;  %v2593_v45 = vld [vmem:[#allocation4 + $0x2e8] sm:$0xff]  }
 0xa84   :  { %v1295_v48 = vpop.f32.mrb[18].mxu1 }
 0xa85   :  { %v1299_v49 = vmax.f32 %v1293_v46, 0.0  ;;  %v1296_v50 = vadd.f32 %v2004_v44, %v1295_v48  ;;  %v2372_v51 = vpop.f32.mrb[19].mxu1  ;;  %v2592_v44 = vld [vmem:[#allocation4 + $0x2e0] sm:$0xff]  }
 0xa86   :  { %v2036_v51 = vld [vmem:[#allocation6 + $0x14] ss:$0 sm:$0xff] }
 0xa87   :  { %v1300_v53 = vmax.f32 %v1296_v50, 0.0  ;;  %v1305_v54 = vadd.f32 %v2013_v52, %v1299_v49  ;;  %v2594_v49 = vld [vmem:[#allocation4 + $0x2f0] sm:$0xff]   ;;  %v2595_v50 = vld [vmem:[#allocation4 + $0x2f8] sm:$0xff]  }
 0xa89   :  { %v1306_v55 = vadd.f32 %v2013_v52, %v1300_v53 }
 0xa8b   :  { %v2483_v56 = vpack.c.bf16 %v1306_v55, %v1305_v54 }
 0xa8d   :  { %2484 = vmatprep.subr.bf16.mxu0 %v2483_v56 }
 0xa8e   :  { %2486 = vmatpush3.bf16.msra.mxu0 %v2483_v56 }
 0xa8f   :  { %2400 = vmatprep.subr.bf16.mxu0 %v2678_v0 }
 0xa91   :  { %2378 = vmatmul.mubr.msk.f32.vlgmr.msra.gmra.mrb[20].mxu0 %vm97_vm0, %v2600_v57 }
 0xa92   :  { %2416 = vmatprep.mubr.msk.bf16.mxu0 %vm2679_vm1, %v2678_v0  ;;  %2401 = vmatpush3.bf16.msra.mxu0 %v2572_v59  ;;  %v2045_v59 = vld [vmem:[#allocation6 + $0x15] ss:$0 sm:$0xff] }
 0xa93   :  { %2402 = vmatprep.subr.bf16.mxu0 %v2678_v0 }
 0xa96   :  { %2403 = vmatpush3.bf16.msra.mxu0 %v2573_v60 }
 0xa97   :  { %2404 = vmatprep.subr.bf16.mxu0 %v2678_v0 }
 0xa9a   :  { %2405 = vmatpush3.bf16.msra.mxu0 %v2574_v61 }
 0xa9b   :  { %2406 = vmatprep.subr.bf16.mxu0 %v2678_v0 }
 0xa9e   :  { %2407 = vmatpush3.bf16.msra.mxu0 %v2575_v62 }
 0xa9f   :  { %2408 = vmatprep.subr.bf16.mxu0 %v2678_v0 }
 0xaa2   :  { %2409 = vmatpush3.bf16.msra.mxu0 %v2576_v63 }
 0xaa3   :  { %2410 = vmatprep.subr.bf16.mxu0 %v2678_v0 }
 0xaa6   :  { %2411 = vmatpush3.bf16.msra.mxu0 %v2577_v1 }
 0xaa7   :  { %2412 = vmatprep.subr.bf16.mxu0 %v2678_v0 }
 0xaaa   :  { %2413 = vmatpush3.bf16.msra.mxu0 %v2578_v7 }
 0xaab   :  { %2414 = vmatprep.subr.bf16.mxu0 %v2678_v0 }
 0xaae   :  { %2415 = vmatpush3.bf16.msra.mxu0 %v2579_v8 }
 0xaaf   :  { %2427 = vmatprep.subr.bf16.mxu0 %v2678_v0 }
 0xb64   :  { %v2379_v2 = vpop.f32.mrb[20].mxu0 }
 0xb65   :  { %v1410_v4 = vpop.f32.mrb[21].mxu0 }
 0xb66   :  { %v1419_v5 = vpack.c.bf16 %v2379_v2, %v1410_v4 }
 0xb68   :  { %2397 = vmatmul.mubr.bf16.vlgmr.msra.gmra.mrb[20].mxu1 %v1419_v5 }
 0xb69   :  { %2424 = vmatprep.mubr.msk.f32.mxu1 %vm2679_vm1, %v2678_v0 }
 0xc3b   :  { %v1506_v10 = vpop.f32.mrb[20].mxu1 }
 0xc3c   :  { %v1507_v11 = vadd.f32 %v2016_v9, %v1506_v10  ;;  %v2398_v12 = vpop.f32.mrb[21].mxu1 }
 0xc3d   :  { %v1509_v13 = vpop.f32.mrb[22].mxu1 }
 0xc3e   :  { %v1510_v14 = vadd.f32 %v2016_v9, %v1509_v13  ;;  %v2399_v15 = vpop.f32.mrb[23].mxu1  ;;  %v1513_v16 = vmax.f32 %v1507_v11, 0.0 }
 0xc40   :  { %v1514_v17 = vmax.f32 %v1510_v14, 0.0 }
 0xc42   :  { %v1515_v18 = vpack.c.bf16 %v1514_v17, %v1513_v16 }
 0xc44   :  { %2417 = vmatmul.mubr.bf16.vlgmr.msra.gmra.mrb[24].mxu0 %v1515_v18 }
 0xc45   :  { %2443 = vmatprep.mubr.msk.bf16.mxu0 %vm2679_vm1, %v2678_v0  ;;  %2428 = vmatpush3.bf16.msra.mxu0 %v2580_v20 }
 0xc46   :  { %2429 = vmatprep.subr.bf16.mxu0 %v2678_v0 }
 0xc49   :  { %2430 = vmatpush3.bf16.msra.mxu0 %v2581_v21 }
 0xc4a   :  { %2431 = vmatprep.subr.bf16.mxu0 %v2678_v0 }
 0xc4d   :  { %2432 = vmatpush3.bf16.msra.mxu0 %v2582_v6 }
 0xc4e   :  { %2433 = vmatprep.subr.bf16.mxu0 %v2678_v0 }
 0xc51   :  { %2434 = vmatpush3.bf16.msra.mxu0 %v2583_v22 }
 0xc52   :  { %2435 = vmatprep.subr.bf16.mxu0 %v2678_v0 }
 0xc55   :  { %2436 = vmatpush3.bf16.msra.mxu0 %v2584_v23 }
 0xc56   :  { %2437 = vmatprep.subr.bf16.mxu0 %v2678_v0 }
 0xc59   :  { %2438 = vmatpush3.bf16.msra.mxu0 %v2585_v24 }
 0xc5a   :  { %2439 = vmatprep.subr.bf16.mxu0 %v2678_v0 }
 0xc5d   :  { %2440 = vmatpush3.bf16.msra.mxu0 %v2586_v25 }
 0xc5e   :  { %2441 = vmatprep.subr.bf16.mxu0 %v2678_v0 }
 0xc61   :  { %2442 = vmatpush3.bf16.msra.mxu0 %v2587_v39 }
 0xd17   :  { %v1602_v27 = vpop.f32.mrb[24].mxu0 }
 0xd18   :  { %v1603_v28 = vadd.f32 %v2025_v26, %v1602_v27  ;;  %v2418_v29 = vpop.f32.mrb[25].mxu0 }
 0xd19   :  { %v1605_v30 = vpop.f32.mrb[26].mxu0 }
 0xd1a   :  { %v1609_v31 = vmax.f32 %v1603_v28, 0.0  ;;  %v1606_v32 = vadd.f32 %v2025_v26, %v1605_v30  ;;  %v2419_v33 = vpop.f32.mrb[27].mxu0 }
 0xd1c   :  { %v1610_v35 = vmax.f32 %v1606_v32, 0.0  ;;  %v1615_v36 = vadd.f32 %v2034_v34, %v1609_v31 }
 0xd1e   :  { %v1616_v37 = vadd.f32 %v2034_v34, %v1610_v35 }
 0xd20   :  { %v2488_v3 = vpack.c.bf16 %v1616_v37, %v1615_v36 }
 0xd22   :  { %2489 = vmatpush3.bf16.msra.mxu1 %v2488_v3 }
 0xd23   :  { %2447 = vmatprep.subr.bf16.mxu1 %v2678_v0 }
 0xd25   :  { %2425 = vmatmul.mubr.msk.f32.vlgmr.msra.gmra.mrb[24].mxu1 %vm97_vm0, %v58_v38 }
 0xd26   :  { %2463 = vmatprep.mubr.msk.bf16.mxu1 %vm2679_vm1, %v2678_v0  ;;  %2448 = vmatpush3.bf16.msra.mxu1 %v2588_v40 }
 0xd27   :  { %2449 = vmatprep.subr.bf16.mxu1 %v2678_v0 }
 0xd2a   :  { %2450 = vmatpush3.bf16.msra.mxu1 %v2589_v41 }
 0xd2b   :  { %2451 = vmatprep.subr.bf16.mxu1 %v2678_v0 }
 0xd2e   :  { %2452 = vmatpush3.bf16.msra.mxu1 %v2590_v42 }
 0xd2f   :  { %2453 = vmatprep.subr.bf16.mxu1 %v2678_v0 }
 0xd32   :  { %2454 = vmatpush3.bf16.msra.mxu1 %v2591_v43 }
 0xd33   :  { %2455 = vmatprep.subr.bf16.mxu1 %v2678_v0 }
 0xd36   :  { %2456 = vmatpush3.bf16.msra.mxu1 %v2592_v44 }
 0xd37   :  { %2457 = vmatprep.subr.bf16.mxu1 %v2678_v0 }
 0xd3a   :  { %2458 = vmatpush3.bf16.msra.mxu1 %v2593_v45 }
 0xd3b   :  { %2459 = vmatprep.subr.bf16.mxu1 %v2678_v0 }
 0xd3e   :  { %2460 = vmatpush3.bf16.msra.mxu1 %v2594_v49 }
 0xd3f   :  { %2461 = vmatprep.subr.bf16.mxu1 %v2678_v0 }
 0xd42   :  { %2462 = vmatpush3.bf16.msra.mxu1 %v2595_v50 }
 0xdf8   :  { %v1686_v46 = vpop.f32.mrb[24].mxu1 }
 0xdf9   :  { %v1690_v47 = vpack.c.bf16 %v1686_v46, %v1686_v46  ;;  %v2426_v48 = vpop.f32.mrb[25].mxu1 }
 0xdfb   :  { %2444 = vmatmul.mubr.bf16.vlgmr.msra.gmra.mrb[28].mxu0 %v1690_v47 }
 0xece   :  { %v1795_v52 = vpop.f32.mrb[28].mxu0 }
 0xecf   :  { %v1796_v53 = vadd.f32 %v2036_v51, %v1795_v52  ;;  %v2445_v54 = vpop.f32.mrb[29].mxu0 }
 0xed0   :  { %v1798_v55 = vpop.f32.mrb[30].mxu0 }
 0xed1   :  { %v1801_v56 = vmax.f32 %v1796_v53, 0.0  ;;  %v2446_v57 = vpop.f32.mrb[31].mxu0 }
 0xed3   :  { %v1802_v58 = vpack.c.bf16 %v1801_v56, %v1801_v56 }
 0xed5   :  { %2464 = vmatmul.mubr.bf16.vlgmr.msra.gmra.mrb[28].mxu1 %v1802_v58 }
 0xfa8   :  { %v1907_v60 = vpop.f32.mrb[28].mxu1 }
 0xfa9   :  { %v1908_v61 = vadd.f32 %v2045_v59, %v1907_v60  ;;  %v2465_v62 = vpop.f32.mrb[29].mxu1 }
 0xfaa   :  { %v1910_v63 = vpop.f32.mrb[30].mxu1 }
 0xfab   :  { %1913 = vmax.xlane.f32.xlu0 %v1908_v61  ;;  %v2466_v1 = vpop.f32.mrb[31].mxu1 }
0x1038   :  { %v1914_v2 = vpop.xlane.xlu0 %1913 }
0x1039   :  { %v1915_v0 = vsub.f32 %v1908_v61, %v1914_v2 }
0x103b   :  { %v1916_v4 = vmul.f32 1.442695, %v1915_v0 }
0x103d   :  { %2596 = vpow2.f32 %v1916_v4 }
0x1047   :  { %v2597_v5 = vpop.eup %2596 }
0x1048   :  { %1918 = vadd.xlane.f32.xlu0 %v2597_v5 }
0x10d5   :  { %v1919_v7 = vpop.xlane.xlu0 %1918 }
0x10d6   :  { %2598 = vlog2.f32 %v1919_v7 }
0x10e0   :  { %v2599_v8 = vpop.eup %2598 }
0x10e1   :  { %v1921_v9 = vmul.f32 0.6931472, %v2599_v8 }
0x10e3   :  { %v1922_v10 = vsub.f32 %v1915_v0, %v1921_v9 }
0x10e5   :  { %1923 = vst [vmem:[%s2889_s3] sm:$0xff] %v1922_v10 }
0x10e6   :  { %1928 = vsyncpa [#allocation3], 1 }
0x10e7   :  { %1929 = vsyncpa [#allocation5], 1 }

</bundles_post_ra>
